<compile_context>
chip_gen: v5e
topology: v5e:2x2
jax: 0.10.0
libtpu: 0.0.40
codegen_flags: <defaults>
</compile_context>

<pallas_src>
import math
import functools

import jax
import jax.numpy as jnp
from jax import lax
from jax.experimental import pallas as pl
from jax.experimental.pallas import tpu as pltpu


# ----------------------------------------------------------------------------
# Pallas kernel: one (batch b, head-block hb) tile per grid point.
# ----------------------------------------------------------------------------
def _mha_kernel(q_ref, k_ref, v_ref,
                wq_ref, wk_ref, wv_ref,
                bq_ref, bk_ref, bv_ref,
                qm_ref, km_ref,
                o_ref,
                *, causal, dh, hb_heads):
    q = q_ref[0]          # (Lq, D)    bf16
    k = k_ref[0]          # (Lk, D)    bf16
    v = v_ref[0]          # (Lk, D)    bf16
    wq = wq_ref[...]      # (D, HBdh)  bf16, pre-transposed (K-major): y = x @ W
    wk = wk_ref[...]
    wv = wv_ref[...]
    bq = bq_ref[...]      # (1, HBdh)  f32
    bk = bk_ref[...]
    bv = bv_ref[...]
    qm = qm_ref[0]        # (Lq, 1)    f32
    km = km_ref[0]        # (1, Lk)    f32

    Lq = q.shape[0]
    Lk = k.shape[0]
    inv_scale = jnp.float32(1.0 / math.sqrt(float(dh)))

    # bf16 operands feed the MXU at full rate; accumulate in f32, add f32 bias,
    # fold the 1/sqrt(dh) scale into Q (O(Lq*dh) instead of O(Lq*Lk)), then cast
    # back to bf16 so the score / attention matmuls are also bf16-fed.
    qh_all = ((jnp.dot(q, wq, preferred_element_type=jnp.float32) + bq)
              * inv_scale).astype(jnp.bfloat16)                           # (Lq, HBdh)
    kh_all = (jnp.dot(k, wk, preferred_element_type=jnp.float32)
              + bk).astype(jnp.bfloat16)                                  # (Lk, HBdh)
    vh_all = (jnp.dot(v, wv, preferred_element_type=jnp.float32)
              + bv).astype(jnp.bfloat16)                                  # (Lk, HBdh)

    # attn_mask = (q_mask outer k_mask) != 0, optionally lower-triangular (tril).
    # Computed once per program; shared across all HB heads in the block.
    mask = (qm * km) != 0.0                                               # (Lq, Lk)
    if causal is not None:
        row = lax.broadcasted_iota(jnp.int32, (Lq, Lk), 0)
        col = lax.broadcasted_iota(jnp.int32, (Lq, Lk), 1)
        mask = jnp.logical_and(mask, (col - row) <= causal)
    maskf = mask.astype(jnp.float32)
    neg = jnp.float32(-2.0 ** 32 + 1.0) * inv_scale   # pre-scaled additive mask
    add_mask = jnp.where(mask, jnp.float32(0.0), neg)                     # (Lq, Lk)

    # Contract last dims (A @ B^T) without materializing a transpose.
    cdims_t = (((1,), (1,)), ((), ()))

    # Per-head attention within the block (HB is small and static -> unrolled).
    # Each head's result is stored straight into its lane slice of o_ref so no
    # per-head temporaries stay live across iterations and there is no final
    # concatenate copy.
    for h in range(hb_heads):
        lo = h * dh
        hi = lo + dh
        qh = qh_all[:, lo:hi]                                             # (Lq, dh)
        kh = kh_all[:, lo:hi]                                             # (Lk, dh)
        vh = vh_all[:, lo:hi]                                             # (Lk, dh)

        # scores = add_mask + (Q / sqrt(dh)) @ K^T   (matches torch.baddbmm order)
        s = add_mask + lax.dot_general(qh, kh, cdims_t,
                                       preferred_element_type=jnp.float32)

        # Numerically stable softmax; approx reciprocal goes to the EUP slot so
        # the broadcasted normalization on the (Lq, Lk) tile is a VPU multiply.
        m = jnp.max(s, axis=-1, keepdims=True)
        e = jnp.exp(s - m)
        inv_l = pl.reciprocal(jnp.sum(e, axis=-1, keepdims=True), approx=True)
        p = (e * inv_l) * maskf    # weights = weights * attn_mask (zeroes masked rows)

        # TODO(synk): nn.Dropout is identity at inference; stochastic dropout not applied.
        o_ref[0, :, lo:hi] = jnp.dot(p.astype(jnp.bfloat16), vh,
                                     preferred_element_type=jnp.float32
                                     ).astype(o_ref.dtype)                # (Lq, dh)


# ----------------------------------------------------------------------------
# Helpers: head-block sizing and VMEM budget.
# ----------------------------------------------------------------------------
def _pick_head_block(H, dh, D, lane_target):
    """Largest head block whose lane width is (8,128)-legal and <= lane_target."""
    divisors = [hb for hb in range(1, H + 1) if H % hb == 0]
    legal = [hb for hb in divisors if (hb * dh == D) or (hb * dh) % 128 == 0]
    under = [hb for hb in legal if hb * dh <= lane_target]
    if under:
        return max(under)
    return min(legal)   # always non-empty: hb == H gives hb*dh == D


def _vmem_limit_bytes(Lq, Lk, D, HBdh, out_itemsize):
    rup = lambda x, m: -(-x // m) * m
    Lq_p, Lk_p = rup(Lq, 8), rup(Lk, 8)
    D_p, HBdh_p = rup(D, 128), rup(HBdh, 128)
    blocks = (
        (Lq_p + 2 * Lk_p) * D_p * 2          # q/k/v blocks (bf16)
        + 3 * D_p * HBdh_p * 2               # weight blocks (bf16)
        + 3 * 8 * HBdh_p * 4                 # bias rows (f32, sublane-padded)
        + (Lq_p * 128 + 8 * Lk_p) * 4        # mask blocks (f32, padded)
        + Lq_p * HBdh_p * out_itemsize       # output block
    )
    temps = (
        3 * max(Lq_p, Lk_p) * HBdh_p * 4     # projected q/k/v (f32 pre-cast)
        + 6 * Lq_p * Lk_p * 4                # score / exp / mask temporaries
    )
    needed = 2 * blocks + temps + (4 << 20)  # double-buffered blocks + headroom
    try:
        phys = pltpu.get_tpu_info().vmem_capacity_bytes
    except Exception:
        phys = 64 << 20                      # conservative (v7x physical VMEM)
    return int(min(max(needed, 32 << 20), phys - (12 << 20)))


# ----------------------------------------------------------------------------
# Wrapper: parameter prep + pallas_call.  Output is written directly in
# (B, Lq, D) layout with head h occupying columns [h*dh : (h+1)*dh], matching
# torch.cat(torch.split(out, B, 0), 2) head ordering.
# ----------------------------------------------------------------------------
def multi_head_attention(q, k, v, q_mask, k_mask,
                         wq, bq, wk, bk, wv, bv,
                         *, num_heads, causal=None):
    B, Lq, D = q.shape
    Lk = k.shape[1]
    H = num_heads
    assert D % H == 0
    dh = D // H

    # Generation-aware head-block lane width (v6e/v7x MXU is 256-wide, v5e 128).
    kind = jax.devices()[0].device_kind.lower()
    older = any(t in kind for t in ("v2", "v3", "v4", "v5 lite", "v5e", "v5lite"))
    lane_target = 128 if older else 256
    HB = _pick_head_block(H, dh, D, lane_target)
    HBdh = HB * dh
    n_hblocks = H // HB

    # bf16 operands (halves DMA, full-rate MXU); biases stay f32.
    cdt = jnp.bfloat16
    qc, kc, vc = q.astype(cdt), k.astype(cdt), v.astype(cdt)
    # Pre-transpose weights once (K-major) so the in-kernel projection is x @ W.
    wq_t, wk_t, wv_t = wq.T.astype(cdt), wk.T.astype(cdt), wv.T.astype(cdt)
    bq2 = bq.reshape(1, D).astype(jnp.float32)
    bk2 = bk.reshape(1, D).astype(jnp.float32)
    bv2 = bv.reshape(1, D).astype(jnp.float32)

    # Masks shaped so the kernel forms the outer product by broadcasting.
    qm = q_mask.astype(jnp.float32).reshape(B, Lq, 1)
    km = k_mask.astype(jnp.float32).reshape(B, 1, Lk)

    vmem_limit = _vmem_limit_bytes(Lq, Lk, D, HBdh, jnp.dtype(q.dtype).itemsize)
    kernel = functools.partial(_mha_kernel, causal=causal, dh=dh, hb_heads=HB)

    out = pl.pallas_call(
        kernel,
        out_shape=jax.ShapeDtypeStruct((B, Lq, D), q.dtype),
        grid_spec=pltpu.PrefetchScalarGridSpec(
            num_scalar_prefetch=0,
            grid=(B, n_hblocks),
            in_specs=[
                pl.BlockSpec((1, Lq, D), lambda b, hb: (b, 0, 0)),    # q
                pl.BlockSpec((1, Lk, D), lambda b, hb: (b, 0, 0)),    # k
                pl.BlockSpec((1, Lk, D), lambda b, hb: (b, 0, 0)),    # v
                pl.BlockSpec((D, HBdh), lambda b, hb: (0, hb)),       # Wq^T cols
                pl.BlockSpec((D, HBdh), lambda b, hb: (0, hb)),       # Wk^T cols
                pl.BlockSpec((D, HBdh), lambda b, hb: (0, hb)),       # Wv^T cols
                pl.BlockSpec((1, HBdh), lambda b, hb: (0, hb)),       # bq block
                pl.BlockSpec((1, HBdh), lambda b, hb: (0, hb)),       # bk block
                pl.BlockSpec((1, HBdh), lambda b, hb: (0, hb)),       # bv block
                pl.BlockSpec((1, Lq, 1), lambda b, hb: (b, 0, 0)),    # q_mask
                pl.BlockSpec((1, 1, Lk), lambda b, hb: (b, 0, 0)),    # k_mask
            ],
            out_specs=pl.BlockSpec((1, Lq, HBdh), lambda b, hb: (b, 0, hb)),
        ),
        compiler_params=pltpu.CompilerParams(
            dimension_semantics=("parallel", "parallel"),
            vmem_limit_bytes=vmem_limit),
    )(qc, kc, vc, wq_t, wk_t, wv_t, bq2, bk2, bv2, qm, km)

    return out


# ----------------------------------------------------------------------------
# Pure-JAX f32 reference (mirrors the PyTorch forward exactly) for verification.
# ----------------------------------------------------------------------------
def multi_head_attention_ref(q, k, v, q_mask, k_mask,
                             wq, bq, wk, bk, wv, bv,
                             *, num_heads, causal=None):
    H = num_heads
    D = q.shape[-1]
    dh = D // H
    Q = q @ wq.T + bq
    K = k @ wk.T + bk
    V = v @ wv.T + bv
    Qh = jnp.concatenate(jnp.split(Q, H, axis=2), axis=0)
    Kh = jnp.concatenate(jnp.split(K, H, axis=2), axis=0)
    Vh = jnp.concatenate(jnp.split(V, H, axis=2), axis=0)
    mask = (q_mask[:, :, None] * k_mask[:, None, :]) != 0
    mask = jnp.tile(mask, (H, 1, 1))
    if causal is not None:
        Lq, Lk = mask.shape[1], mask.shape[2]
        tri = (jnp.arange(Lk)[None, :] - jnp.arange(Lq)[:, None]) <= causal
        mask = jnp.logical_and(mask, tri[None])
    add = jnp.where(mask, 0.0, jnp.float32(-2.0 ** 32 + 1.0))
    w = add + jnp.einsum('bqd,bkd->bqk', Qh, Kh)
    w = w / jnp.float32(math.sqrt(float(dh)))
    w = jax.nn.softmax(w, axis=-1)
    w = w * mask.astype(w.dtype)
    out = jnp.einsum('bqk,bkd->bqd', w, Vh)
    out = jnp.concatenate(jnp.split(out, H, axis=0), axis=2)
    return out


def _xavier_uniform(key, shape):
    fan_out, fan_in = shape
    limit = math.sqrt(6.0 / (fan_in + fan_out))
    return jax.random.uniform(key, shape, jnp.float32, -limit, limit)


if __name__ == "__main__":
    B, L, D, H = 2, 8, 32, 4
    dh = D // H

    root = jax.random.PRNGKey(0)
    kq, kk, kv, kwq, kwk, kwv = jax.random.split(root, 6)

    q = jax.random.normal(kq, (B, L, D), jnp.float32)
    k = jax.random.normal(kk, (B, L, D), jnp.float32)
    v = jax.random.normal(kv, (B, L, D), jnp.float32)

    # Deterministic parameters (xavier_uniform weights, zero biases).
    wq = _xavier_uniform(kwq, (D, D))
    wk = _xavier_uniform(kwk, (D, D))
    wv = _xavier_uniform(kwv, (D, D))
    bq = jnp.zeros((D,), jnp.float32)
    bk = jnp.zeros((D,), jnp.float32)
    bv = jnp.zeros((D,), jnp.float32)

    # Padding masks: batch 0 fully valid, batch 1 valid for first 5 positions.
    lengths = jnp.array([L, 5])
    q_mask = (jnp.arange(L)[None, :] < lengths[:, None]).astype(jnp.float32)
    k_mask = q_mask

    # bf16 MXU feeds + approx reciprocal -> compare against the f32 reference
    # with a bf16-appropriate tolerance.
    ok = True
    for causal in (None, 0):
        out = multi_head_attention(q, k, v, q_mask, k_mask,
                                   wq, bq, wk, bk, wv, bv,
                                   num_heads=H, causal=causal)
        out = jax.block_until_ready(out)
        ref = multi_head_attention_ref(q, k, v, q_mask, k_mask,
                                       wq, bq, wk, bk, wv, bv,
                                       num_heads=H, causal=causal)
        ok = ok and bool(jnp.allclose(out, ref, rtol=5e-2, atol=5e-2))

    if ok:
        print("KERNEL_OK")
    else:
        print("KERNEL_MISMATCH")
</pallas_src>

<mosaic_0001>
module attributes {stable_mosaic.version = 11 : i64} {
  func.func @_mha_kernel(%arg0: i32, %arg1: i32, %arg2: memref<1x8x32xbf16, #tpu.memory_space<vmem>>, %arg3: memref<1x8x32xbf16, #tpu.memory_space<vmem>>, %arg4: memref<1x8x32xbf16, #tpu.memory_space<vmem>>, %arg5: memref<32x32xbf16, #tpu.memory_space<vmem>>, %arg6: memref<32x32xbf16, #tpu.memory_space<vmem>>, %arg7: memref<32x32xbf16, #tpu.memory_space<vmem>>, %arg8: memref<1x32xf32, #tpu.memory_space<vmem>>, %arg9: memref<1x32xf32, #tpu.memory_space<vmem>>, %arg10: memref<1x32xf32, #tpu.memory_space<vmem>>, %arg11: memref<1x8x1xf32, #tpu.memory_space<vmem>>, %arg12: memref<1x1x8xf32, #tpu.memory_space<vmem>>, %arg13: memref<1x8x32xf32, #tpu.memory_space<vmem>>) attributes {dimension_semantics = [#tpu.dimension_semantics<parallel>, #tpu.dimension_semantics<parallel>], iteration_bounds = array<i64: 2, 1>, scalar_prefetch = 0 : i64, scratch_operands = 0 : i64, tpu.core_type = #tpu.core_type<tc>, window_params = [{transform_indices = @transform_0, window_bounds = array<i64: 1, 8, 32>}, {transform_indices = @transform_1, window_bounds = array<i64: 1, 8, 32>}, {transform_indices = @transform_2, window_bounds = array<i64: 1, 8, 32>}, {transform_indices = @transform_3, window_bounds = array<i64: 32, 32>}, {transform_indices = @transform_4, window_bounds = array<i64: 32, 32>}, {transform_indices = @transform_5, window_bounds = array<i64: 32, 32>}, {transform_indices = @transform_6, window_bounds = array<i64: 1, 32>}, {transform_indices = @transform_7, window_bounds = array<i64: 1, 32>}, {transform_indices = @transform_8, window_bounds = array<i64: 1, 32>}, {transform_indices = @transform_9, window_bounds = array<i64: 1, 8, 1>}, {transform_indices = @transform_10, window_bounds = array<i64: 1, 1, 8>}, {transform_indices = @transform_11, window_bounds = array<i64: 1, 8, 32>}]} {
    %c0 = arith.constant 0 : index
    %c0_0 = arith.constant 0 : index
    %c0_1 = arith.constant 0 : index
    %0 = vector.load %arg2[%c0, %c0_0, %c0_1] : memref<1x8x32xbf16, #tpu.memory_space<vmem>>, vector<1x8x32xbf16>
    %1 = vector.shape_cast %0 : vector<1x8x32xbf16> to vector<8x32xbf16>
    %c0_2 = arith.constant 0 : index
    %c0_3 = arith.constant 0 : index
    %c0_4 = arith.constant 0 : index
    %2 = vector.load %arg3[%c0_2, %c0_3, %c0_4] : memref<1x8x32xbf16, #tpu.memory_space<vmem>>, vector<1x8x32xbf16>
    %3 = vector.shape_cast %2 : vector<1x8x32xbf16> to vector<8x32xbf16>
    %c0_5 = arith.constant 0 : index
    %c0_6 = arith.constant 0 : index
    %c0_7 = arith.constant 0 : index
    %4 = vector.load %arg4[%c0_5, %c0_6, %c0_7] : memref<1x8x32xbf16, #tpu.memory_space<vmem>>, vector<1x8x32xbf16>
    %5 = vector.shape_cast %4 : vector<1x8x32xbf16> to vector<8x32xbf16>
    %c0_8 = arith.constant 0 : index
    %c0_9 = arith.constant 0 : index
    %6 = vector.load %arg5[%c0_8, %c0_9] : memref<32x32xbf16, #tpu.memory_space<vmem>>, vector<32x32xbf16>
    %c0_10 = arith.constant 0 : index
    %c0_11 = arith.constant 0 : index
    %7 = vector.load %arg6[%c0_10, %c0_11] : memref<32x32xbf16, #tpu.memory_space<vmem>>, vector<32x32xbf16>
    %c0_12 = arith.constant 0 : index
    %c0_13 = arith.constant 0 : index
    %8 = vector.load %arg7[%c0_12, %c0_13] : memref<32x32xbf16, #tpu.memory_space<vmem>>, vector<32x32xbf16>
    %c0_14 = arith.constant 0 : index
    %c0_15 = arith.constant 0 : index
    %9 = vector.load %arg8[%c0_14, %c0_15] : memref<1x32xf32, #tpu.memory_space<vmem>>, vector<1x32xf32>
    %c0_16 = arith.constant 0 : index
    %c0_17 = arith.constant 0 : index
    %10 = vector.load %arg9[%c0_16, %c0_17] : memref<1x32xf32, #tpu.memory_space<vmem>>, vector<1x32xf32>
    %c0_18 = arith.constant 0 : index
    %c0_19 = arith.constant 0 : index
    %11 = vector.load %arg10[%c0_18, %c0_19] : memref<1x32xf32, #tpu.memory_space<vmem>>, vector<1x32xf32>
    %c0_20 = arith.constant 0 : index
    %c0_21 = arith.constant 0 : index
    %c0_22 = arith.constant 0 : index
    %12 = vector.load %arg11[%c0_20, %c0_21, %c0_22] : memref<1x8x1xf32, #tpu.memory_space<vmem>>, vector<1x8x1xf32>
    %13 = vector.shape_cast %12 : vector<1x8x1xf32> to vector<8x1xf32>
    %c0_23 = arith.constant 0 : index
    %c0_24 = arith.constant 0 : index
    %c0_25 = arith.constant 0 : index
    %14 = vector.load %arg12[%c0_23, %c0_24, %c0_25] : memref<1x1x8xf32, #tpu.memory_space<vmem>>, vector<1x1x8xf32>
    %15 = vector.shape_cast %14 : vector<1x1x8xf32> to vector<1x8xf32>
    %cst = arith.constant dense<0.000000e+00> : vector<8x32xf32>
    %16 = tpu.matmul %1, %6, %cst {dimension_numbers = #tpu.dot_dimension_numbers<[1], [0], [0], [1], [0, 0, 1, 1], [], []>} : vector<8x32xbf16>, vector<32x32xbf16>, vector<8x32xf32> -> vector<8x32xf32>
    %17 = vector.broadcast %9 : vector<1x32xf32> to vector<8x32xf32>
    %18 = arith.addf %16, %17 : vector<8x32xf32>
    %cst_26 = arith.constant 0.353553385 : f32
    %19 = vector.broadcast %cst_26 : f32 to vector<8x32xf32>
    %20 = arith.mulf %18, %19 : vector<8x32xf32>
    %21 = arith.truncf %20 : vector<8x32xf32> to vector<8x32xbf16>
    %cst_27 = arith.constant dense<0.000000e+00> : vector<8x32xf32>
    %22 = tpu.matmul %3, %7, %cst_27 {dimension_numbers = #tpu.dot_dimension_numbers<[1], [0], [0], [1], [0, 0, 1, 1], [], []>} : vector<8x32xbf16>, vector<32x32xbf16>, vector<8x32xf32> -> vector<8x32xf32>
    %23 = vector.broadcast %10 : vector<1x32xf32> to vector<8x32xf32>
    %24 = arith.addf %22, %23 : vector<8x32xf32>
    %25 = arith.truncf %24 : vector<8x32xf32> to vector<8x32xbf16>
    %cst_28 = arith.constant dense<0.000000e+00> : vector<8x32xf32>
    %26 = tpu.matmul %5, %8, %cst_28 {dimension_numbers = #tpu.dot_dimension_numbers<[1], [0], [0], [1], [0, 0, 1, 1], [], []>} : vector<8x32xbf16>, vector<32x32xbf16>, vector<8x32xf32> -> vector<8x32xf32>
    %27 = vector.broadcast %11 : vector<1x32xf32> to vector<8x32xf32>
    %28 = arith.addf %26, %27 : vector<8x32xf32>
    %29 = arith.truncf %28 : vector<8x32xf32> to vector<8x32xbf16>
    %30 = vector.broadcast %13 : vector<8x1xf32> to vector<8x8xf32>
    %31 = vector.broadcast %15 : vector<1x8xf32> to vector<8x8xf32>
    %32 = arith.mulf %30, %31 : vector<8x8xf32>
    %cst_29 = arith.constant 0.000000e+00 : f32
    %33 = vector.broadcast %cst_29 : f32 to vector<8x8xf32>
    %34 = arith.cmpf one, %32, %33 : vector<8x8xf32>
    %35 = arith.extui %34 : vector<8x8xi1> to vector<8x8xi32>
    %36 = arith.sitofp %35 : vector<8x8xi32> to vector<8x8xf32>
    %cst_30 = arith.constant -4.2949673E+9 : f32
    %cst_31 = arith.constant 0.353553385 : f32
    %37 = arith.mulf %cst_30, %cst_31 : f32
    %cst_32 = arith.constant 0.000000e+00 : f32
    %38 = vector.broadcast %cst_32 : f32 to vector<8x8xf32>
    %39 = vector.broadcast %37 : f32 to vector<8x8xf32>
    %40 = arith.select %34, %38, %39 : vector<8x8xi1>, vector<8x8xf32>
    %41 = vector.extract_strided_slice %21 {offsets = [0, 0], sizes = [8, 8], strides = [1, 1]} : vector<8x32xbf16> to vector<8x8xbf16>
    %42 = vector.extract_strided_slice %25 {offsets = [0, 0], sizes = [8, 8], strides = [1, 1]} : vector<8x32xbf16> to vector<8x8xbf16>
    %43 = vector.extract_strided_slice %29 {offsets = [0, 0], sizes = [8, 8], strides = [1, 1]} : vector<8x32xbf16> to vector<8x8xbf16>
    %cst_33 = arith.constant dense<0.000000e+00> : vector<8x8xf32>
    %44 = tpu.matmul %41, %42, %cst_33 {dimension_numbers = #tpu.dot_dimension_numbers<[1], [1], [0], [0], [0, 0, 1, 0], [], []>} : vector<8x8xbf16>, vector<8x8xbf16>, vector<8x8xf32> -> vector<8x8xf32>
    %45 = arith.addf %40, %44 : vector<8x8xf32>
    %cst_34 = arith.constant dense<0xFF800000> : vector<8xf32>
    %46 = vector.multi_reduction <maximumf>, %45, %cst_34 [1] : vector<8x8xf32> to vector<8xf32>
    %47 = vector.shape_cast %46 : vector<8xf32> to vector<8x1xf32>
    %48 = vector.broadcast %47 : vector<8x1xf32> to vector<8x8xf32>
    %49 = arith.subf %45, %48 : vector<8x8xf32>
    %50 = math.exp %49 : vector<8x8xf32>
    %cst_35 = arith.constant dense<0.000000e+00> : vector<8xf32>
    %51 = vector.multi_reduction <add>, %50, %cst_35 [1] : vector<8x8xf32> to vector<8xf32>
    %52 = vector.shape_cast %51 : vector<8xf32> to vector<8x1xf32>
    %53 = tpu.reciprocal %52 {approx = true} : vector<8x1xf32> -> vector<8x1xf32>
    %54 = vector.broadcast %53 : vector<8x1xf32> to vector<8x8xf32>
    %55 = arith.mulf %50, %54 : vector<8x8xf32>
    %56 = arith.mulf %55, %36 : vector<8x8xf32>
    %57 = arith.truncf %56 : vector<8x8xf32> to vector<8x8xbf16>
    %cst_36 = arith.constant dense<0.000000e+00> : vector<8x8xf32>
    %58 = tpu.matmul %57, %43, %cst_36 {dimension_numbers = #tpu.dot_dimension_numbers<[1], [0], [0], [1], [0, 0, 1, 1], [], []>} : vector<8x8xbf16>, vector<8x8xbf16>, vector<8x8xf32> -> vector<8x8xf32>
    %c0_37 = arith.constant 0 : index
    %c0_38 = arith.constant 0 : index
    %c0_39 = arith.constant 0 : index
    %59 = vector.load %arg13[%c0_37, %c0_38, %c0_39] : memref<1x8x32xf32, #tpu.memory_space<vmem>>, vector<1x8x8xf32>
    %60 = vector.shape_cast %59 : vector<1x8x8xf32> to vector<8x8xf32>
    %61 = vector.shape_cast %58 : vector<8x8xf32> to vector<1x8x8xf32>
    tpu.vector_store %arg13[%c0_37, %c0_38, %c0_39], %61 {strides = array<i32>} : memref<1x8x32xf32, #tpu.memory_space<vmem>>, vector<1x8x8xf32>,
    %62 = vector.extract_strided_slice %21 {offsets = [0, 8], sizes = [8, 8], strides = [1, 1]} : vector<8x32xbf16> to vector<8x8xbf16>
    %63 = vector.extract_strided_slice %25 {offsets = [0, 8], sizes = [8, 8], strides = [1, 1]} : vector<8x32xbf16> to vector<8x8xbf16>
    %64 = vector.extract_strided_slice %29 {offsets = [0, 8], sizes = [8, 8], strides = [1, 1]} : vector<8x32xbf16> to vector<8x8xbf16>
    %cst_40 = arith.constant dense<0.000000e+00> : vector<8x8xf32>
    %65 = tpu.matmul %62, %63, %cst_40 {dimension_numbers = #tpu.dot_dimension_numbers<[1], [1], [0], [0], [0, 0, 1, 0], [], []>} : vector<8x8xbf16>, vector<8x8xbf16>, vector<8x8xf32> -> vector<8x8xf32>
    %66 = arith.addf %40, %65 : vector<8x8xf32>
    %cst_41 = arith.constant dense<0xFF800000> : vector<8xf32>
    %67 = vector.multi_reduction <maximumf>, %66, %cst_41 [1] : vector<8x8xf32> to vector<8xf32>
    %68 = vector.shape_cast %67 : vector<8xf32> to vector<8x1xf32>
    %69 = vector.broadcast %68 : vector<8x1xf32> to vector<8x8xf32>
    %70 = arith.subf %66, %69 : vector<8x8xf32>
    %71 = math.exp %70 : vector<8x8xf32>
    %cst_42 = arith.constant dense<0.000000e+00> : vector<8xf32>
    %72 = vector.multi_reduction <add>, %71, %cst_42 [1] : vector<8x8xf32> to vector<8xf32>
    %73 = vector.shape_cast %72 : vector<8xf32> to vector<8x1xf32>
    %74 = tpu.reciprocal %73 {approx = true} : vector<8x1xf32> -> vector<8x1xf32>
    %75 = vector.broadcast %74 : vector<8x1xf32> to vector<8x8xf32>
    %76 = arith.mulf %71, %75 : vector<8x8xf32>
    %77 = arith.mulf %76, %36 : vector<8x8xf32>
    %78 = arith.truncf %77 : vector<8x8xf32> to vector<8x8xbf16>
    %cst_43 = arith.constant dense<0.000000e+00> : vector<8x8xf32>
    %79 = tpu.matmul %78, %64, %cst_43 {dimension_numbers = #tpu.dot_dimension_numbers<[1], [0], [0], [1], [0, 0, 1, 1], [], []>} : vector<8x8xbf16>, vector<8x8xbf16>, vector<8x8xf32> -> vector<8x8xf32>
    %c0_44 = arith.constant 0 : index
    %c0_45 = arith.constant 0 : index
    %c8 = arith.constant 8 : index
    %80 = vector.load %arg13[%c0_44, %c0_45, %c8] : memref<1x8x32xf32, #tpu.memory_space<vmem>>, vector<1x8x8xf32>
    %81 = vector.shape_cast %80 : vector<1x8x8xf32> to vector<8x8xf32>
    %82 = vector.shape_cast %79 : vector<8x8xf32> to vector<1x8x8xf32>
    tpu.vector_store %arg13[%c0_44, %c0_45, %c8], %82 {strides = array<i32>} : memref<1x8x32xf32, #tpu.memory_space<vmem>>, vector<1x8x8xf32>,
    %83 = vector.extract_strided_slice %21 {offsets = [0, 16], sizes = [8, 8], strides = [1, 1]} : vector<8x32xbf16> to vector<8x8xbf16>
    %84 = vector.extract_strided_slice %25 {offsets = [0, 16], sizes = [8, 8], strides = [1, 1]} : vector<8x32xbf16> to vector<8x8xbf16>
    %85 = vector.extract_strided_slice %29 {offsets = [0, 16], sizes = [8, 8], strides = [1, 1]} : vector<8x32xbf16> to vector<8x8xbf16>
    %cst_46 = arith.constant dense<0.000000e+00> : vector<8x8xf32>
    %86 = tpu.matmul %83, %84, %cst_46 {dimension_numbers = #tpu.dot_dimension_numbers<[1], [1], [0], [0], [0, 0, 1, 0], [], []>} : vector<8x8xbf16>, vector<8x8xbf16>, vector<8x8xf32> -> vector<8x8xf32>
    %87 = arith.addf %40, %86 : vector<8x8xf32>
    %cst_47 = arith.constant dense<0xFF800000> : vector<8xf32>
    %88 = vector.multi_reduction <maximumf>, %87, %cst_47 [1] : vector<8x8xf32> to vector<8xf32>
    %89 = vector.shape_cast %88 : vector<8xf32> to vector<8x1xf32>
    %90 = vector.broadcast %89 : vector<8x1xf32> to vector<8x8xf32>
    %91 = arith.subf %87, %90 : vector<8x8xf32>
    %92 = math.exp %91 : vector<8x8xf32>
    %cst_48 = arith.constant dense<0.000000e+00> : vector<8xf32>
    %93 = vector.multi_reduction <add>, %92, %cst_48 [1] : vector<8x8xf32> to vector<8xf32>
    %94 = vector.shape_cast %93 : vector<8xf32> to vector<8x1xf32>
    %95 = tpu.reciprocal %94 {approx = true} : vector<8x1xf32> -> vector<8x1xf32>
    %96 = vector.broadcast %95 : vector<8x1xf32> to vector<8x8xf32>
    %97 = arith.mulf %92, %96 : vector<8x8xf32>
    %98 = arith.mulf %97, %36 : vector<8x8xf32>
    %99 = arith.truncf %98 : vector<8x8xf32> to vector<8x8xbf16>
    %cst_49 = arith.constant dense<0.000000e+00> : vector<8x8xf32>
    %100 = tpu.matmul %99, %85, %cst_49 {dimension_numbers = #tpu.dot_dimension_numbers<[1], [0], [0], [1], [0, 0, 1, 1], [], []>} : vector<8x8xbf16>, vector<8x8xbf16>, vector<8x8xf32> -> vector<8x8xf32>
    %c0_50 = arith.constant 0 : index
    %c0_51 = arith.constant 0 : index
    %c16 = arith.constant 16 : index
    %101 = vector.load %arg13[%c0_50, %c0_51, %c16] : memref<1x8x32xf32, #tpu.memory_space<vmem>>, vector<1x8x8xf32>
    %102 = vector.shape_cast %101 : vector<1x8x8xf32> to vector<8x8xf32>
    %103 = vector.shape_cast %100 : vector<8x8xf32> to vector<1x8x8xf32>
    tpu.vector_store %arg13[%c0_50, %c0_51, %c16], %103 {strides = array<i32>} : memref<1x8x32xf32, #tpu.memory_space<vmem>>, vector<1x8x8xf32>,
    %104 = vector.extract_strided_slice %21 {offsets = [0, 24], sizes = [8, 8], strides = [1, 1]} : vector<8x32xbf16> to vector<8x8xbf16>
    %105 = vector.extract_strided_slice %25 {offsets = [0, 24], sizes = [8, 8], strides = [1, 1]} : vector<8x32xbf16> to vector<8x8xbf16>
    %106 = vector.extract_strided_slice %29 {offsets = [0, 24], sizes = [8, 8], strides = [1, 1]} : vector<8x32xbf16> to vector<8x8xbf16>
    %cst_52 = arith.constant dense<0.000000e+00> : vector<8x8xf32>
    %107 = tpu.matmul %104, %105, %cst_52 {dimension_numbers = #tpu.dot_dimension_numbers<[1], [1], [0], [0], [0, 0, 1, 0], [], []>} : vector<8x8xbf16>, vector<8x8xbf16>, vector<8x8xf32> -> vector<8x8xf32>
    %108 = arith.addf %40, %107 : vector<8x8xf32>
    %cst_53 = arith.constant dense<0xFF800000> : vector<8xf32>
    %109 = vector.multi_reduction <maximumf>, %108, %cst_53 [1] : vector<8x8xf32> to vector<8xf32>
    %110 = vector.shape_cast %109 : vector<8xf32> to vector<8x1xf32>
    %111 = vector.broadcast %110 : vector<8x1xf32> to vector<8x8xf32>
    %112 = arith.subf %108, %111 : vector<8x8xf32>
    %113 = math.exp %112 : vector<8x8xf32>
    %cst_54 = arith.constant dense<0.000000e+00> : vector<8xf32>
    %114 = vector.multi_reduction <add>, %113, %cst_54 [1] : vector<8x8xf32> to vector<8xf32>
    %115 = vector.shape_cast %114 : vector<8xf32> to vector<8x1xf32>
    %116 = tpu.reciprocal %115 {approx = true} : vector<8x1xf32> -> vector<8x1xf32>
    %117 = vector.broadcast %116 : vector<8x1xf32> to vector<8x8xf32>
    %118 = arith.mulf %113, %117 : vector<8x8xf32>
    %119 = arith.mulf %118, %36 : vector<8x8xf32>
    %120 = arith.truncf %119 : vector<8x8xf32> to vector<8x8xbf16>
    %cst_55 = arith.constant dense<0.000000e+00> : vector<8x8xf32>
    %121 = tpu.matmul %120, %106, %cst_55 {dimension_numbers = #tpu.dot_dimension_numbers<[1], [0], [0], [1], [0, 0, 1, 1], [], []>} : vector<8x8xbf16>, vector<8x8xbf16>, vector<8x8xf32> -> vector<8x8xf32>
    %c0_56 = arith.constant 0 : index
    %c0_57 = arith.constant 0 : index
    %c24 = arith.constant 24 : index
    %122 = vector.load %arg13[%c0_56, %c0_57, %c24] : memref<1x8x32xf32, #tpu.memory_space<vmem>>, vector<1x8x8xf32>
    %123 = vector.shape_cast %122 : vector<1x8x8xf32> to vector<8x8xf32>
    %124 = vector.shape_cast %121 : vector<8x8xf32> to vector<1x8x8xf32>
    tpu.vector_store %arg13[%c0_56, %c0_57, %c24], %124 {strides = array<i32>} : memref<1x8x32xf32, #tpu.memory_space<vmem>>, vector<1x8x8xf32>,
    return
  }
  func.func @transform_0(%arg0: i32, %arg1: i32) -> (i32, i32, i32) {
    %c0_i32 = arith.constant 0 : i32
    %c0_i32_0 = arith.constant 0 : i32
    %c0_i32_1 = arith.constant 0 : i32
    return %arg0, %c0_i32, %c0_i32_0 : i32, i32, i32
  }
  func.func @transform_1(%arg0: i32, %arg1: i32) -> (i32, i32, i32) {
    %c0_i32 = arith.constant 0 : i32
    %c0_i32_0 = arith.constant 0 : i32
    %c0_i32_1 = arith.constant 0 : i32
    return %arg0, %c0_i32, %c0_i32_0 : i32, i32, i32
  }
  func.func @transform_2(%arg0: i32, %arg1: i32) -> (i32, i32, i32) {
    %c0_i32 = arith.constant 0 : i32
    %c0_i32_0 = arith.constant 0 : i32
    %c0_i32_1 = arith.constant 0 : i32
    return %arg0, %c0_i32, %c0_i32_0 : i32, i32, i32
  }
  func.func @transform_3(%arg0: i32, %arg1: i32) -> (i32, i32) {
    %c0_i32 = arith.constant 0 : i32
    %c0_i32_0 = arith.constant 0 : i32
    return %c0_i32, %arg1 : i32, i32
  }
  func.func @transform_4(%arg0: i32, %arg1: i32) -> (i32, i32) {
    %c0_i32 = arith.constant 0 : i32
    %c0_i32_0 = arith.constant 0 : i32
    return %c0_i32, %arg1 : i32, i32
  }
  func.func @transform_5(%arg0: i32, %arg1: i32) -> (i32, i32) {
    %c0_i32 = arith.constant 0 : i32
    %c0_i32_0 = arith.constant 0 : i32
    return %c0_i32, %arg1 : i32, i32
  }
  func.func @transform_6(%arg0: i32, %arg1: i32) -> (i32, i32) {
    %c0_i32 = arith.constant 0 : i32
    %c0_i32_0 = arith.constant 0 : i32
    return %c0_i32, %arg1 : i32, i32
  }
  func.func @transform_7(%arg0: i32, %arg1: i32) -> (i32, i32) {
    %c0_i32 = arith.constant 0 : i32
    %c0_i32_0 = arith.constant 0 : i32
    return %c0_i32, %arg1 : i32, i32
  }
  func.func @transform_8(%arg0: i32, %arg1: i32) -> (i32, i32) {
    %c0_i32 = arith.constant 0 : i32
    %c0_i32_0 = arith.constant 0 : i32
    return %c0_i32, %arg1 : i32, i32
  }
  func.func @transform_9(%arg0: i32, %arg1: i32) -> (i32, i32, i32) {
    %c0_i32 = arith.constant 0 : i32
    %c0_i32_0 = arith.constant 0 : i32
    %c0_i32_1 = arith.constant 0 : i32
    return %arg0, %c0_i32, %c0_i32_0 : i32, i32, i32
  }
  func.func @transform_10(%arg0: i32, %arg1: i32) -> (i32, i32, i32) {
    %c0_i32 = arith.constant 0 : i32
    %c0_i32_0 = arith.constant 0 : i32
    %c0_i32_1 = arith.constant 0 : i32
    return %arg0, %c0_i32, %c0_i32_0 : i32, i32, i32
  }
  func.func @transform_11(%arg0: i32, %arg1: i32) -> (i32, i32, i32) {
    %c0_i32 = arith.constant 0 : i32
    %c0_i32_0 = arith.constant 0 : i32
    return %arg0, %c0_i32, %arg1 : i32, i32, i32
  }
}

</mosaic_0001>

<bundles_post_ra>
// kernel: tpu_custom_call.1
= control target key start
LH: loop header
LB: loop body
LE: loop exit
PB: predicated region body
PF: predicated region fallthrough
CT: control target
= control target key end

     0   :  { %s2040_s0 = inlined_call_operand.hbm [shape: bf16[2,8,32], index: 0, kind: input, shape index: {}]   ;;  %s2041_s1 = inlined_call_operand.hbm [shape: bf16[2,8,32], index: 1, kind: input, shape index: {}]   ;;  %s2042_s2 = inlined_call_operand.hbm [shape: bf16[2,8,32], index: 2, kind: input, shape index: {}]   ;;  %s2043_s3 = inlined_call_operand.vmem [shape: bf16[32,32], index: 3, kind: input, shape index: {}]   ;;  %s2044_s4 = inlined_call_operand.hbm [shape: bf16[32,32], index: 4, kind: input, shape index: {}]   ;;  %s2045_s5 = inlined_call_operand.hbm [shape: bf16[32,32], index: 5, kind: input, shape index: {}]   ;;  %s2046_s6 = inlined_call_operand.vmem [shape: f32[1,32], index: 6, kind: input, shape index: {}]   ;;  %s2047_s7 = inlined_call_operand.vmem [shape: f32[1,32], index: 7, kind: input, shape index: {}]   ;;  %s2048_s8 = inlined_call_operand.vmem [shape: f32[1,32], index: 8, kind: input, shape index: {}]   ;;  %s2049_s9 = inlined_call_operand.vmem [shape: f32[2,8,1], index: 9, kind: input, shape index: {}]   ;;  %s2050_s10 = inlined_call_operand.vmem [shape: f32[2,1,8], index: 10, kind: input, shape index: {}]   ;;  %s2051_s11 = inlined_call_operand.hbm [shape: f32[2,8,32], index: 11, kind: output, shape index: {}]  }
   0x1   :  { %2065 = sst [smem:[#allocation24_spill]] %s2041_s1 }
   0x2   :  { %2066 = sst [smem:[#allocation25_spill]] %s2044_s4 }
   0x3   :  { %2067 = sst [smem:[#allocation26_spill]] %s2045_s5 }
   0x4   :  { %2068 = sst [smem:[#allocation27_spill]] %s2047_s7 }
   0x5   :  { %2069 = sst [smem:[#allocation28_spill]] %s2048_s8 }
   0x6   :  { %2070 = sst [smem:[#allocation29_spill]] %s2049_s9 }
   0x7   :  { %2071 = sst [smem:[#allocation30_spill]] %s2050_s10 }
   0x8   :  { %2072 = sst [smem:[#allocation31_spill]] %s2051_s11 }
   0x9   :  { %16 = vsyncpa [#allocation3], 0 }
   0xa   :  { %18 = vsyncpa [#allocation3 + $0x1], 0 }
   0xb   :  { %19 = vsyncpa [#allocation6], 0 }
   0xc   :  { %21 = vsyncpa [#allocation6 + $0x1], 0 }
   0xd   :  { %22 = vsyncpa [#allocation9], 0 }
   0xe   :  { %23 = vsyncpa [#allocation4], 0 }
   0xf   :  { %25 = vsyncpa [#allocation4 + $0x1], 0  ;;  %s1762_s17 = smov 0   ;;  %s1764_s18 = smov 0  }
  0x10   :  { %s1766_s19 = smov 0   ;;  %s1768_s20 = smov 0  }
  0x11   :  { %s1770_s21 = smov 0   ;;  %s1772_s22 = smov 0  }
  0x12 LB: > { %2073 = sst [smem:[#allocation16_spill]] %s1667_s17  ;;  %s1793_s23 = sadd.s32 4294967295, %s1687_s22   ;;  %s1687_s22 = sphi %s1772_s22, %s31_s22   ;;  %s1683_s21 = sphi %s1770_s21, %s2108_s21   ;;  %s1679_s20 = sphi %s1768_s20, %s2107_s20   ;;  %s1675_s19 = sphi %s1766_s19, %s2106_s19   ;;  %s1671_s18 = sphi %s1764_s18, %s2110_s18   ;;  %s1667_s17 = sphi %s1762_s17, %s2109_s17  }
  0x13   : > { %2074 = sst [smem:[#allocation17_spill]] %s1675_s19  ;;  %p1254_p0 = scmp.ge.s32.totalorder %s1687_s22, 1 }
  0x14   : > { %2075 = sst [smem:[#allocation18_spill]] %s1683_s21  ;;  %p64_p1 = scmp.eq.s32.totalorder %s1793_s23, 0 }
  0x15   : > { %2076 = sst [smem:[#allocation19_spill]] %s1687_s22  ;;  %p362_p2 = scmp.lt.s32.totalorder %s1687_s22, 3 }
  0x16   : > { %s2077_s4 = sld [smem:[#allocation25_spill]]  ;;  %s1689_s28 = smov [#allocation8]  }
  0x17   : > { %p1801_p3 = pnand %p1254_p0, %p362_p2  ;;  %s384_s29 = sshll.u32 %s1689_s28, 4  ;;  %s385_s29 = int_to_ptr.vmem [resolvable:$true] %s384_s29 }
  0x18   : > { %s2052_s12 = smov 64   ;;  %s2053_s13 = smov 4  }
  0x19   : > { %p1338_p4 = pneg %p1801_p3  ;;  %s1253_s14 = sadd.s32 4294967294, %s1687_s22  }
  0x1a   : > { %s43_s15 = sadd.s32 1, %s1683_s21  ;;  %s50_s16 = sadd.s32 1, %s1675_s19 }
  0x1b   : > { %p1809_p5 = pnand %p1338_p4, %p64_p1  ;;  %p45_p7 = scmp.ge.s32.totalorder %s43_s15, 2 }
  0x1c   : > { %s382_s26 = sshll.u32 %s2077_s4, 4  ;;  %p57_p8 = scmp.ne.s32.totalorder %s1675_s19, %s1671_s18  ;;  %s383_s26 = int_to_ptr.hbm [resolvable:$true] %s382_s26 }
  0x1d   : > { %1341 = dma.hbm_to_vmem [thread:$0]  (!%p1809_p5), %s383_s26, 256, %s385_s29, [#allocation9], %s2052_s12, %s2052_s12, %s2053_s13  }
  0x1e   : > { %p58_p9 = scmp.eq.s32.totalorder %s1687_s22, 0  ;;  %p63_p10 = scmp.ne.s32.totalorder %s1671_s18, %s1667_s17 }
  0x1f   : > { %s2112_s15 = smov (%p45_p7, %s43_s15), 0  ;;  %p349_p13 = scmp.eq.s32.totalorder %s1793_s23, 1 }
  0x20   : > { %2080 = sst [smem:[#allocation20_spill]] %s2112_s15  ;;  %p1829_p11 = por %p58_p9, %p57_p8 }
  0x21   : > { %p1835_p12 = por %p64_p1, %p63_p10  ;;  %s47_s26 = ssub.s32 %s1683_s21, %s2112_s15 }
  0x22   : > { %p48_p0 = scmp.eq.s32.totalorder %s47_s26, 0  ;;  %p355_p2 = scmp.eq.s32.totalorder %s1253_s14, 1 }
  0x23   : > { %p1842_p4 = por %p349_p13, %p57_p8  ;;  %p1361_p7 = scmp.lt.s32.totalorder %s1687_s22, 2 }
  0x24   : > { %s1848_s29 = scalar_select %p48_p0, %s1675_s19, %s50_s16  }
  0x25   : > { %s2083_s28 = scalar_select %p1842_p4, 1, 0 }
  0x26   : > { %2085 = sst [smem:[#allocation22_spill]] %s1848_s29  ;;  %p1850_p9 = por %p355_p2, %p63_p10 }
  0x27   : > { %2084 = sst [smem:[#allocation21_spill]] %s2083_s28  ;;  %s432_s13 = sand.u32 1, %s1675_s19  }
  0x28   : > { %s2086_s12 = scalar_select %p1850_p9, 1, 0 }
  0x29   : > { %s1855_s4 = sshll.u32 %s432_s13, 2  ;;  %s1263_s17 = sshll.u32 %s1683_s21, 2 }
  0x2a   : > { %2087 = sst [smem:[#allocation23_spill]] %s2086_s12  ;;  %p1860_p6 = pnand %p1361_p7, %p1829_p11 }
  0x2b   : > { %s451_s26 = sand.u32 1, %s1687_s22   ;;  %s2089_s1 = sld [smem:[#allocation24_spill]] }
  0x2c   : > { %s455_s12 = scalar_lea.vmem [#allocation5], %s1855_s4  ;;  %s452_s21 = scalar_lea.sflag [#allocation6], %s451_s26 }
  0x2d   : > { %s463_s19 = sshll.u32 %s455_s12, 4  ;;  %s2090_s5 = sld [smem:[#allocation26_spill]]  ;;  %s464_s19 = int_to_ptr.vmem [resolvable:$true] %s463_s19 }
  0x2e   : > { %s1692_s22 = smov [#allocation10]   ;;  %s2091_s15 = smov 4  }
  0x2f   : > { %s400_s9 = sshll.u32 %s1692_s22, 4  ;;  %s440_s26 = scalar_lea.hbm %s2040_s0, %s1263_s17  ;;  %s401_s9 = int_to_ptr.vmem [resolvable:$true] %s400_s9 }
  0x30   : > { %s433_s28 = scalar_lea.sflag [#allocation3], %s432_s13  ;;  %s478_s30 = scalar_lea.hbm %s2042_s2, %s1263_s17 }
  0x31   : > { %s459_s29 = scalar_lea.hbm %s2089_s1, %s1263_s17  ;;  %s474_s10 = scalar_lea.vmem [#allocation7], %s1855_s4 }
  0x32   : > { %s461_s11 = sshll.u32 %s459_s29, 4  ;;  %s2092_s29 = smov 64   ;;  %s462_s11 = int_to_ptr.hbm [resolvable:$true] %s461_s11 }
  0x33   : > { %1351 = dma.hbm_to_vmem [thread:$0]  (!%p1860_p6), %s462_s11, 64, %s464_s19, %s452_s21  }
  0x34   : > { %s398_s8 = sshll.u32 %s2090_s5, 4  ;;  %s442_s11 = sshll.u32 %s440_s26, 4  ;;  %s399_s8 = int_to_ptr.hbm [resolvable:$true] %s398_s8  ;;  %s443_s11 = int_to_ptr.hbm [resolvable:$true] %s442_s11 }
  0x35   : > { %1344 = dma.hbm_to_vmem [thread:$0]  (!%p1809_p5), %s399_s8, 256, %s401_s9, [#allocation9], %s2092_s29, %s2092_s29, %s2091_s15  }
  0x36   : > { %s436_s19 = scalar_lea.vmem [#allocation2], %s1855_s4  ;;  %s480_s5 = sshll.u32 %s478_s30, 4  ;;  %s481_s5 = int_to_ptr.hbm [resolvable:$true] %s480_s5 }
  0x37   : > { %s444_s1 = sshll.u32 %s436_s19, 4  ;;  %s482_s7 = sshll.u32 %s474_s10, 4  ;;  %s445_s1 = int_to_ptr.vmem [resolvable:$true] %s444_s1  ;;  %s483_s7 = int_to_ptr.vmem [resolvable:$true] %s482_s7 }
  0x38   : > { %1348 = dma.hbm_to_vmem [thread:$0]  (!%p1860_p6), %s443_s11, 64, %s445_s1, %s433_s28  }
  0x39   : > { %1354 = dma.hbm_to_vmem [thread:$0]  (!%p1860_p6), %s481_s5, 64, %s483_s7, %s452_s21  }
  0x3a   : > { %504 = sbr.rel (%p1801_p3) target bundleno = 1001 (0x3e9), region = 64  ;;  %s1894_s8 = sand.u32 (!%p1801_p3), 1, %s1671_s18  }
  0x3b   : > { %s1897_s1 = sshll.u32 (!%p1801_p3), %s1894_s8, 2  ;;  %s507_s9 = scalar_lea.sflag (!%p1801_p3), [#allocation3], %s1894_s8 }
  0x3c   : > { %s510_s17 = scalar_lea.vmem (!%p1801_p3), [#allocation2], %s1897_s1 }
  0x3f   : > { %1650 = dma.done.wait (%p1835_p12), %s507_s9, 64  }
  0x40   : > { %1652 = vsyncadd (%p1835_p12), %s507_s9, 4294967232  ;;  %s516_s4 = sand.u32 1, %s1793_s23   ;;  %s520_s7 = scalar_lea.vmem [#allocation5], %s1897_s1 }
  0x41   : > { %s517_s5 = scalar_lea.sflag [#allocation6], %s516_s4 }
  0x42   : > { %1654 = dma.done.wait (%p1835_p12), %s517_s5, 128  }
  0x43   : > { %1656 = vsyncadd (%p1835_p12), %s517_s5, 4294967168  ;;  %s530_s10 = scalar_lea.vmem [#allocation7], %s1897_s1 }
  0x44   : > { %1658 = dma.done.wait (%p64_p1), [#allocation9], 512  }
  0x45   : > { %1660 = vsyncadd (%p64_p1), [#allocation9], 4294966784  ;;  %v1317_v0 = vld [vmem:[%s2043_s3 + $0x8] sm:$0xff]  ;;  %v1319_v1 = vld [vmem:[#allocation8 + $0x8] sm:$0xff]  ;;  %vm666_vm0 = vcmask 261120   ;;  %v1693_v6 = vmov 0  }
  0x46   : > { %v1316_v2 = vld [vmem:[%s2043_s3] sm:$0xff]  ;;  %676 = vmatpush.bf16.msra.mxu0 %v1317_v0  ;;  %709 = vmatpush.bf16.msra.mxu1 %v1319_v1  ;;  %v1318_v3 = vld [vmem:[#allocation8] sm:$0xff]  ;;  %v632_v5 = vld [vmem:[%s520_s7] sm:$0xf]  ;;  %s2093_s12 = sld [smem:[#allocation27_spill]]  ;;  %p623_p1 = scmp.lt.s32.totalorder %s1679_s20, 1 }
  0x47   : > { %v631_v4 = vld [vmem:[%s510_s17] sm:$0xf]  ;;  %1426 = vset.pattern.permute.xlu0 %v1693_v6  ;;  %vm762_vm1 = vcmask 64512   ;;  %s2094_s19 = sld [smem:[#allocation30_spill]]  ;;  %s1694_s24 = smov 112   ;;  %v1321_v42 = vld [vmem:[#allocation10 + $0x8] sm:$0xff] }
  0x48   : > { %v1427_v7 = vld [vmem:[%s2046_s6] ss:$0 sm:$0xff]  ;;  %s1932_s16 = scalar_select %p623_p1, %s1679_s20, 1  ;;  %v1697_v35 = vmov -1.5185002e+09   ;;  %741 = vmatpush.bf16.msra.mxu2 %v1321_v42  ;;  %v1320_v43 = vld [vmem:[#allocation10] sm:$0xff] }
  0x49   : > { %s1695_s30 = smov 120   ;;  %s1696_s17 = smov 104   ;;  %v633_v44 = vld [vmem:[%s530_s10] sm:$0xf]  ;;  %vm799_vm3 = vcmask 1043456   ;;  %vm888_vm4 = vcmask 130112  }
  0x4a   : > { %677 = vmatpush.bf16.msra.mxu0 %v1316_v2  ;;  %710 = vmatpush.bf16.msra.mxu1 %v1318_v3  ;;  %s1275_s9 = sshll.u32 %s1932_s16, 3  ;;  %s2096_s7 = sld [smem:[#allocation29_spill]]  ;;  %vm952_vm5 = vcmask 195712   ;;  %vm1016_vm6 = vcmask 261312  }
  0x4b   : > { %s2097_s14 = sld [smem:[#allocation28_spill]]  ;;  %s1274_s23 = sshll.u32 %s1894_s8, 3 }
  0x4c   : > { %v1428_v8 = vld [vmem:[%s2093_s12] ss:$0 sm:$0xff]  ;;  %742 = vmatpush.bf16.msra.mxu2 %v1320_v43  ;;  %s1991_s25 = scalar_lea.vmem [#allocation11], %s1274_s23  ;;  %s1699_s15 = smov 8  }
  0x4d   : > { %1284 = vmatmul.msk.bf16.vlgmr.msra.gmra.mxu0 %vm666_vm0, %v631_v4  ;;  %1293 = vmatmul.msk.bf16.vlgmr.msra.gmra.mxu1 %vm666_vm0, %v632_v5  ;;  %s629_s22 = scalar_lea.vmem %s2094_s19, %s1932_s16  ;;  %s1700_s29 = smov 16  }
  0x4e   : > { %v1429_v32 = vld [vmem:[%s629_s22] ss:$0 sm:$0xff]  ;;  %s1701_s12 = smov 24   ;;  %s1313_s16 = sshll.u32 %s1679_s20, 3 }
  0x4f   : > { %1302 = vmatmul.msk.bf16.vlgmr.msra.gmra.mxu2 %vm666_vm0, %v633_v44  ;;  %s2099_s22 = sld [smem:[#allocation31_spill]]  ;;  %s1019_s4 = scalar_lea.sflag [#allocation4], %s1894_s8 }
  0x50   : > { %s626_s21 = scalar_lea.vmem %s2096_s7, %s1275_s9  ;;  %s1032_s9 = sshll.u32 %s1991_s25, 4  ;;  %s1033_s9 = int_to_ptr.vmem [resolvable:$true] %s1032_s9 }
  0x51   : > { %v649_v23 = vld [vmem:[%s626_s21] sm:$0xff] }
  0x52   : > { %v1430_v62 = vld [vmem:[%s2097_s14] ss:$0 sm:$0xff] }
  0xca   : > { %v679_v9 = vpop.f32.mrf.mxu0  ;;  %v712_v10 = vpop.f32.mrf.mxu1 }
  0xcb   : > { %v680_v11 = vadd.f32 %v1427_v7, %v679_v9  ;;  %v713_v12 = vadd.f32 %v1428_v8, %v712_v10 }
  0xcd   : > { %v683_v13 = vmul.f32 0.35355338, %v680_v11  ;;  %v716_v14 = vpack.c.bf16 %v713_v12, %v713_v12 }
  0xcf   : > { %v684_v15 = vpack.c.bf16 %v683_v13, %v683_v13  ;;  %v823_v16 = vunpack.c.l.b16 %v716_v14  ;;  %v767_v17 = vsel %vm762_vm1, %v716_v14, 0 }
  0xd0   : > { %776 = vmatpush.bf16.xpose.msra.mxu3 %v767_v17 }
  0xd1   : > { %v818_v18 = vunpack.c.l.b16 %v684_v15  ;;  %v824_v19 = vpack.c.b16 %v823_v16, %v823_v16 }
  0xd2   : > { %v681_v20 = vpop.f32.mrf.mxu0  ;;  %v714_v21 = vpop.f32.mrf.mxu1 }
  0xd3   : > { %892 = vrot.lane.b32.xlu1 %v824_v19, %s1694_s24  ;;  %825 = vrot.lane.b32.xlu0 %v824_v19, %s1695_s30  ;;  %v819_v22 = vpack.c.b16 %v818_v18, %v818_v18  ;;  %v744_v63 = vpop.f32.mrf.mxu2  ;;  %v1698_v20 = vmov 0.0  }
  0xd4   : > { %v745_v0 = vadd.f32 %v1430_v62, %v744_v63 }
  0xd5   : > { %890 = vrot.lane.b32.xlu2 %v819_v22, %s1694_s24 }
  0xd6   : > { %v748_v1 = vpack.c.bf16 %v745_v0, %v745_v0 }
  0xd7   : > { %1304 = vmatmul.msk.bf16.vlgmr.msra.gmra.mxu3 %vm762_vm1, %v684_v15 }
  0xd8   : > { %v801_v2 = vsel %vm799_vm3, %v748_v1, 0 }
  0xd9   : > { %810 = vmatpush.bf16.msrb.mxu0 %v801_v2 }
  0xdb   : > { %956 = vrot.lane.b32.xlu1 %v824_v19, %s1696_s17  ;;  %820 = vrot.lane.b32.xlu0 %v819_v22, %s1695_s30  ;;  %v746_v3 = vpop.f32.mrf.mxu2 }
  0xdd   : > { %954 = vrot.lane.b32.xlu2 %v819_v22, %s1696_s17 }
  0xe3   : > { %751 = vperm.xlu0 %1426, %v649_v23  }
 0x12f   : > { %v891_v28 = vpop.permute.xlu2 %890 }
 0x137   : > { %v955_v39 = vpop.permute.xlu2 %954 }
 0x145   : > { %v893_v24 = vpop.permute.xlu1 %892  ;;  %v826_v25 = vpop.permute.xlu0 %825 }
 0x146   : > { %v831_v26 = vsel %vm762_vm1, %v826_v25, 0  ;;  %v898_v27 = vsel %vm762_vm1, %v893_v24, 0 }
 0x147   : > { %840 = vmatpush.bf16.xpose.msrb.mxu1 %v831_v26  ;;  %907 = vmatpush.bf16.xpose.msrb.mxu3 %v898_v27  ;;  %v861_v26 = vunpack.c.l.b16 %v748_v1 }
 0x149   : > { %v862_v27 = vpack.c.b16 %v861_v26, %v861_v26 }
 0x14d   : > { %v957_v29 = vpop.permute.xlu1 %956  ;;  %v821_v30 = vpop.permute.xlu0 %820 }
 0x14e   : > { %v962_v31 = vsel %vm762_vm1, %v957_v29, 0  ;;  %1306 = vmatmul.msk.bf16.vlgmr.msrb.gmra.mxu1 %vm762_vm1, %v821_v30  ;;  %1308 = vmatmul.msk.bf16.vlgmr.msrb.gmra.mxu3 %vm762_vm1, %v891_v28 }
 0x14f   : > { %971 = vmatpush.bf16.xpose.msra.mxu1 %v962_v31 }
 0x155   : > { %v752_v33 = vpop.permute.xlu0 %751 }
 0x156   : > { %v1960_v34 = vmul.f32 %v1429_v32, %v752_v33 }
 0x158   : > { %vm758_vm2 = vcmp.ne.f32.partialorder %v1960_v34, 0.0 }
 0x159   : > { %v761_v36 = vsel %vm758_vm2, 0.0, %v1697_v35  ;;  %v1303_v21 = vsel %vm758_vm2, 1.0, %v1698_v20 }
 0x15a   : > { %v778_v37 = vpop.f32.mrf.mxu3 }
 0x15b   : > { %v782_v38 = vadd.f32 %v778_v37, %v761_v36 }
 0x15d   : > { %v783_v40 = vsel %vm762_vm1, %v782_v38, -inf }
 0x15e   : > { %1310 = vmatmul.msk.bf16.vlgmr.msra.gmra.mxu1 %vm762_vm1, %v955_v39  ;;  %784 = vmax.xlane.f32.xlu2 %v783_v40 }
 0x162   : > { %v780_v41 = vpop.f32.mrf.mxu3 }
 0x1cb   : > { %v842_v45 = vpop.f32.mrf.mxu1 }
 0x1cc   : > { %v846_v46 = vadd.f32 %v842_v45, %v761_v36 }
 0x1ce   : > { %v847_v47 = vsel %vm762_vm1, %v846_v46, -inf }
 0x1cf   : > { %848 = vmax.xlane.f32.xlu1 %v847_v47 }
 0x1d1   : > { %v785_v48 = vpop.xlane.xlu2 %784  ;;  %v909_v49 = vpop.f32.mrf.mxu3 }
 0x1d2   : > { %v786_v50 = vsub.f32 %v782_v38, %v785_v48  ;;  %v913_v51 = vadd.f32 %v909_v49, %v761_v36 }
 0x1d3   : > { %v844_v52 = vpop.f32.mrf.mxu1 }
 0x1d4   : > { %v787_v53 = vmul.f32 1.442695, %v786_v50  ;;  %v914_v54 = vsel %vm762_vm1, %v913_v51, -inf }
 0x1d5   : > { %915 = vmax.xlane.f32.xlu2 %v914_v54 }
 0x1d6   : > { %1431 = vpow2.f32 %v787_v53 }
 0x1d9   : > { %v911_v55 = vpop.f32.mrf.mxu3 }
 0x1db   : > { %v973_v56 = vpop.f32.mrf.mxu1 }
 0x1dc   : > { %v1432_v57 = vpop.eup %1431  ;;  %v977_v58 = vadd.f32 %v973_v56, %v761_v36 }
 0x1dd   : > { %v789_v59 = vsel %vm762_vm1, %v1432_v57, 0.0 }
 0x1de   : > { %790 = vadd.xlane.f32.xlu2 %v789_v59  ;;  %v978_v60 = vsel %vm762_vm1, %v977_v58, -inf }
 0x1df   : > { %979 = vmax.xlane.f32.xlu0 %v978_v60 }
 0x1e3   : > { %v975_v61 = vpop.f32.mrf.mxu1 }
 0x242   : > { %v849_v4 = vpop.xlane.xlu1 %848 }
 0x243   : > { %v850_v5 = vsub.f32 %v846_v46, %v849_v4 }
 0x245   : > { %v851_v6 = vmul.f32 1.442695, %v850_v5 }
 0x247   : > { %1433 = vpow2.f32 %v851_v6 }
 0x248   : > { %v916_v7 = vpop.xlane.xlu2 %915 }
 0x249   : > { %v917_v8 = vsub.f32 %v913_v51, %v916_v7 }
 0x24b   : > { %v918_v9 = vmul.f32 1.442695, %v917_v8 }
 0x24d   : > { %v1434_v10 = vpop.eup %1433  ;;  %1435 = vpow2.f32 %v918_v9 }
 0x24e   : > { %v853_v11 = vsel %vm762_vm1, %v1434_v10, 0.0 }
 0x24f   : > { %854 = vadd.xlane.f32.xlu1 %v853_v11 }
 0x251   : > { %v791_v12 = vpop.xlane.xlu2 %790 }
 0x252   : > { %1437 = vrcp.f32 %v791_v12  ;;  %v980_v13 = vpop.xlane.xlu0 %979 }
 0x253   : > { %v1436_v14 = vpop.eup %1435  ;;  %v981_v15 = vsub.f32 %v977_v58, %v980_v13 }
 0x254   : > { %v920_v16 = vsel %vm762_vm1, %v1436_v14, 0.0 }
 0x255   : > { %v982_v17 = vmul.f32 1.442695, %v981_v15  ;;  %921 = vadd.xlane.f32.xlu0 %v920_v16 }
 0x257   : > { %1439 = vpow2.f32 %v982_v17 }
 0x258   : > { %v1438_v18 = vpop.eup %1437 }
 0x259   : > { %v793_v19 = vmul.f32 %v1438_v18, %v1432_v57 }
 0x25b   : > { %v794_v22 = vmul.f32 %v1303_v21, %v793_v19 }
 0x25d   : > { %v1440_v23 = vpop.eup %1439  ;;  %v795_v24 = vpack.c.bf16 %v794_v22, %v794_v22 }
 0x25e   : > { %v984_v25 = vsel %vm762_vm1, %v1440_v23, 0.0 }
 0x25f   : > { %985 = vadd.xlane.f32.xlu2 %v984_v25  ;;  %1305 = vmatmul.msk.bf16.vlgmr.msrb.gmra.mxu0 %vm762_vm1, %v795_v24 }
 0x268   : > { %863 = vrot.lane.b32.xlu1 %v862_v27, %s1695_s30  ;;  %s1030_s30 = scalar_lea.hbm %s2099_s22, %s1313_s16 }
 0x269   : > { %927 = vrot.lane.b32.xlu0 %v862_v27, %s1694_s24  ;;  %s2100_s24 = smov %s2099_s22 }
 0x26a   : > { %s1617_s27 = scalar_lea.hbm %s2100_s24, 16 }
 0x277   : > { %991 = vrot.lane.b32.xlu2 %v862_v27, %s1696_s17  ;;  %s1034_s17 = sshll.u32 %s1030_s30, 4  ;;  %s1035_s17 = int_to_ptr.hbm [resolvable:$true] %s1034_s17 }
 0x278   : > { %s1611_s5 = sshra.s32 %s1035_s17, 4  ;;  %s1612_s5 = int_to_ptr.hbm [resolvable:$true] %s1611_s5 }
 0x279   : > { %s1613_s7 = scalar_lea.hbm %s1612_s5, 8  ;;  %p1618_p8 = scmp.lt.s32.totalorder %s1612_s5, %s2100_s24 }
 0x27a   : > { %p1614_p3 = scmp.ne.s32.totalorder %s1612_s5, %s1613_s7  ;;  %p1619_p10 = scmp.lt.s32.totalorder %s1617_s27, %s1613_s7 }
 0x27c   : > { %p1615_p5 = pnand %p1614_p3, %p1842_p4  ;;  %p1620_p11 = por %p1619_p10, %p1618_p8 }
 0x27e   : > { %p1616_p6 = pneg %p1615_p5 }
 0x280   : > { %p1621_p12 = pnand %p1620_p11, %p1616_p6 }
 0x2c2   : > { %v855_v28 = vpop.xlane.xlu1 %854 }
 0x2c3   : > { %1441 = vrcp.f32 %v855_v28 }
 0x2c8   : > { %v922_v29 = vpop.xlane.xlu0 %921 }
 0x2c9   : > { %1443 = vrcp.f32 %v922_v29  ;;  %v1442_v30 = vpop.eup %1441 }
 0x2ca   : > { %v857_v33 = vmul.f32 %v1442_v30, %v1434_v10 }
 0x2cc   : > { %v858_v35 = vmul.f32 %v1303_v21, %v857_v33 }
 0x2ce   : > { %v859_v44 = vpack.c.bf16 %v858_v35, %v858_v35 }
 0x2cf   : > { %v1444_v32 = vpop.eup %1443 }
 0x2d0   : > { %v924_v34 = vmul.f32 %v1444_v32, %v1436_v14 }
 0x2d2   : > { %v986_v31 = vpop.xlane.xlu2 %985  ;;  %v925_v36 = vmul.f32 %v1303_v21, %v924_v34 }
 0x2d3   : > { %1445 = vrcp.f32 %v986_v31 }
 0x2d4   : > { %v926_v45 = vpack.c.bf16 %v925_v36, %v925_v36 }
 0x2d9   : > { %v1446_v46 = vpop.eup %1445 }
 0x2da   : > { %v864_v37 = vpop.permute.xlu1 %863  ;;  %v992_v38 = vpop.permute.xlu2 %991  ;;  %v988_v48 = vmul.f32 %v1446_v46, %v1440_v23 }
 0x2db   : > { %v997_v39 = vsel %vm799_vm3, %v992_v38, 0  ;;  %v928_v40 = vpop.permute.xlu0 %927  ;;  %v869_v41 = vsel %vm799_vm3, %v864_v37, 0 }
 0x2dc   : > { %v933_v42 = vsel %vm799_vm3, %v928_v40, 0  ;;  %v812_v43 = vpop.f32.mrf.mxu0  ;;  %878 = vmatpush.bf16.msrb.mxu2 %v869_v41  ;;  %v989_v49 = vmul.f32 %v1303_v21, %v988_v48 }
 0x2dd   : > { %816 = vst.msk [vmem:[%s1991_s25] sm:$0xff] %vm762_vm1, %v812_v43  ;;  %942 = vmatpush.bf16.msra.mxu0 %v933_v42 }
 0x2de   : > { %v990_v50 = vpack.c.bf16 %v989_v49, %v989_v49 }
 0x2df   : > { %1307 = vmatmul.msk.bf16.vlgmr.msrb.gmra.mxu2 %vm762_vm1, %v859_v44 }
 0x2e0   : > { %1006 = vmatpush.bf16.msra.mxu2 %v997_v39  ;;  %1309 = vmatmul.msk.bf16.vlgmr.msra.gmra.mxu0 %vm762_vm1, %v926_v45 }
 0x2e4   : > { %v814_v47 = vpop.f32.mrf.mxu0 }
 0x2ef   : > { %1311 = vmatmul.msk.bf16.vlgmr.msra.gmra.mxu2 %vm762_vm1, %v990_v50 }
 0x35d   : > { %v944_v51 = vpop.f32.mrf.mxu0 }
 0x362   : > { %v880_v52 = vpop.f32.mrf.mxu2 }
 0x363   : > { %885 = vrot.lane.b32.xlu1 %v880_v52, %s1699_s15 }
 0x365   : > { %v946_v53 = vpop.f32.mrf.mxu0 }
 0x36a   : > { %v882_v54 = vpop.f32.mrf.mxu2 }
 0x36b   : > { %949 = vrot.lane.b32.xlu1 %v944_v51, %s1700_s29 }
 0x372   : > { %v1008_v55 = vpop.f32.mrf.mxu2 }
 0x373   : > { %1013 = vrot.lane.b32.xlu0 %v1008_v55, %s1701_s12 }
 0x37a   : > { %v1010_v56 = vpop.f32.mrf.mxu2 }
 0x3d5   : > { %v886_v57 = vpop.permute.xlu1 %885 }
 0x3d6   : > { %889 = vst.msk [vmem:[%s1991_s25] sm:$0xff] %vm888_vm4, %v886_v57 }
 0x3dd   : > { %v950_v58 = vpop.permute.xlu1 %949 }
 0x3de   : > { %953 = vst.msk [vmem:[%s1991_s25] sm:$0xff] %vm952_vm5, %v950_v58 }
 0x3e5   : > { %v1014_v59 = vpop.permute.xlu0 %1013 }
 0x3e6   : > { %1017 = vst.msk [vmem:[%s1991_s25] sm:$0xff] %vm1016_vm6, %v1014_v59 }
 0x3e7   : > { %1624 = shalt.err (!%p1621_p12)
}
 0x3e8   : > { %1336 = dma.vmem_to_hbm [thread:$0]  (%p1842_p4), %s1033_s9, 128, %s1035_s17, %s1019_s4  }
 0x3e9 PF: > { %s2101_s8 = sld [smem:[#allocation16_spill]] }
 0x3ea   : > { %s2103_s14 = sld [smem:[#allocation19_spill]] }
 0x3ef   : > { %s1046_s23 = sand.u32 1, %s2101_s8  }
 0x3f0   : > { %p2104_p13 = scmp.ge.s32.totalorder %s2103_s14, 2  ;;  %s1047_s25 = scalar_lea.sflag [#allocation4], %s1046_s23 }
 0x3f2   : > { %p1356_p0 = pnand %p2104_p13, %p1850_p9 }
 0x3f4   : > { %p1357_p2 = pneg %p1356_p0 }
 0x3f6   : > { %1662 = dma.done.wait (%p1357_p2), %s1047_s25, 128  }
 0x3f7   : > { %1664 = vsyncadd (%p1357_p2), %s1047_s25, 4294967168  ;;  %s31_s22 = sadd.s32 1, %s2103_s14   ;;  %s2105_s15 = sld [smem:[#allocation17_spill]] }
 0x3f8   : > { %p28_p7 = scmp.ge.s32.totalorder %s31_s22, 4   ;;  %s2106_s19 = sld [smem:[#allocation22_spill]] }
 0x3f9   : > { %s2107_s20 = sld [smem:[#allocation18_spill]]  ;;  %s2109_s17 = smov %s1671_s18 }
 0x3fa   : > { %s2108_s21 = sld [smem:[#allocation20_spill]]  ;;  %30 = sbr.rel (!%p28_p7) target bundleno = 18 (0x12), region = 161 }
 0x3fd   : > { %s2110_s18 = smov %s2105_s15 }
 0x3ff   :  { %1053 = vsyncpa [#allocation3], 1 }
 0x400   :  { %1055 = vsyncpa [#allocation3 + $0x1], 1 }
 0x401   :  { %1056 = vsyncpa [#allocation6], 1 }
 0x402   :  { %1058 = vsyncpa [#allocation6 + $0x1], 1 }
 0x403   :  { %1059 = vsyncpa [#allocation9], 1 }
 0x404   :  { %1060 = vsyncpa [#allocation4], 1 }
 0x405   :  { %1062 = vsyncpa [#allocation4 + $0x1], 1 }

</bundles_post_ra>
